<compile_context>
chip_gen: v7x
topology: tpu7x:2x2x1
jax: 0.10.0
libtpu: 0.0.40
codegen_flags: <defaults>
</compile_context>

<pallas_src>
import jax
import jax.numpy as jnp
from jax.experimental import pallas as pl
from jax.experimental.pallas import tpu as pltpu


def _round_up(x, m):
    return ((x + m - 1) // m) * m


def _mlp_kernel(x_ref, w1_ref, b1_ref, w2_ref, b2_ref, o_ref):
    # Layer 1: bf16 x bf16 -> f32 on the MXU; bias + ReLU on the VPU.
    h = jnp.dot(x_ref[...], w1_ref[...], preferred_element_type=jnp.float32)
    h = jnp.maximum(h + b1_ref[...], 0.0)
    # Layer 2: cast activations back to bf16 to stay on the fast MXU path,
    # accumulate in f32.
    out = jnp.dot(h.astype(w2_ref.dtype), w2_ref[...],
                  preferred_element_type=jnp.float32)
    o_ref[...] = (out + b2_ref[...]).astype(o_ref.dtype)


def net_forward(features, w1, b1, w2, b2, *, max_tile_n=512,
                vmem_budget_bytes=32 * 1024 * 1024):
    """Fused 2-layer MLP forward. features: [N, D_in] -> logits [N, C] (f32)."""
    n, d_in = features.shape
    h_dim = w1.shape[1]
    c = w2.shape[1]
    out_dtype = jnp.float32

    # Lane-dense padding of all minor dims to multiples of 128.
    dp = _round_up(d_in, 128)
    hp = _round_up(h_dim, 128)
    cp = _round_up(c, 128)

    # bf16 streams (f32 accumulation in-kernel). Zero padding is exact:
    # padded input columns hit zero weights, padded hidden units have zero
    # bias (relu(0)=0) and zero W2 rows, padded output columns are sliced off.
    x = jnp.pad(features, ((0, 0), (0, dp - d_in))).astype(jnp.bfloat16)
    w1p = jnp.pad(w1, ((0, dp - d_in), (0, hp - h_dim))).astype(jnp.bfloat16)
    w2p = jnp.pad(w2, ((0, hp - h_dim), (0, cp - c))).astype(jnp.bfloat16)
    b1p = jnp.pad(b1.reshape(1, -1), ((0, 0), (0, hp - h_dim))).astype(jnp.float32)
    b2p = jnp.pad(b2.reshape(1, -1), ((0, 0), (0, cp - c))).astype(jnp.float32)

    # VMEM budget -> largest row tile that fits:
    #   resident (double-buffered) W1/W2/b1/b2 + double-buffered feature (bf16)
    #   and output (f32) tiles.
    resident_bytes = 2 * ((dp * hp + hp * cp) * 2 + (hp + cp) * 4)
    per_row_bytes = 2 * (dp * 2 + cp * 4)
    tile_n = max_tile_n
    while tile_n > 128 and resident_bytes + tile_n * per_row_bytes > vmem_budget_bytes:
        tile_n //= 2
    tile_n = max(tile_n, 128)

    # Don't tile wider than the (128-rounded) problem, and keep >= 2 grid steps
    # when N allows so both v7x TensorCores get half the rows.
    tile_n = min(tile_n, max(128, _round_up(n, 128)))
    if n > 128:
        while tile_n > 128 and _round_up(n, tile_n) // tile_n < 2:
            tile_n //= 2

    n_pad = _round_up(max(n, tile_n), tile_n)
    if n_pad != n:
        x = jnp.pad(x, ((0, n_pad - n), (0, 0)))

    grid = (n_pad // tile_n,)

    out_padded = pl.pallas_call(
        _mlp_kernel,
        out_shape=jax.ShapeDtypeStruct((n_pad, cp), out_dtype),
        grid_spec=pltpu.PrefetchScalarGridSpec(
            num_scalar_prefetch=0,
            grid=grid,
            in_specs=[
                pl.BlockSpec((tile_n, dp), lambda i: (i, 0)),  # streamed feature rows
                pl.BlockSpec((dp, hp), lambda i: (0, 0)),      # W1 (resident)
                pl.BlockSpec((1, hp), lambda i: (0, 0)),       # b1 (resident)
                pl.BlockSpec((hp, cp), lambda i: (0, 0)),      # W2 (resident)
                pl.BlockSpec((1, cp), lambda i: (0, 0)),       # b2 (resident)
            ],
            out_specs=pl.BlockSpec((tile_n, cp), lambda i: (i, 0)),
        ),
        compiler_params=pltpu.CompilerParams(
            dimension_semantics=("parallel",),
            vmem_limit_bytes=48 * 1024 * 1024,
        ),
    )(x, w1p, b1p, w2p, b2p)

    return out_padded[:n, :c]


def _reference_forward(features, w1, b1, w2, b2):
    h = jnp.maximum(features @ w1 + b1, 0.0)
    return h @ w2 + b2


if __name__ == "__main__":
    # Small, module-consistent shapes: N nodes, D_in input features,
    # H hidden units, C output classes.
    N, D_IN, H, C = 128, 32, 64, 16

    key = jax.random.PRNGKey(0)
    k_x, k_w1, k_b1, k_w2, k_b2 = jax.random.split(key, 5)

    features = jax.random.normal(k_x, (N, D_IN), dtype=jnp.float32)
    w1 = jax.random.normal(k_w1, (D_IN, H), dtype=jnp.float32) * 0.1
    b1 = jax.random.normal(k_b1, (1, H), dtype=jnp.float32) * 0.01
    w2 = jax.random.normal(k_w2, (H, C), dtype=jnp.float32) * 0.1
    b2 = jax.random.normal(k_b2, (1, C), dtype=jnp.float32) * 0.01

    out = net_forward(features, w1, b1, w2, b2)
    out = jax.block_until_ready(out)

    # Reference on the same bf16-quantized weights/features (the kernel streams
    # bf16 with f32 accumulation).
    ref = _reference_forward(
        features.astype(jnp.bfloat16).astype(jnp.float32),
        w1.astype(jnp.bfloat16).astype(jnp.float32),
        b1,
        w2.astype(jnp.bfloat16).astype(jnp.float32),
        b2,
    )

    assert out.shape == (N, C)
    assert jnp.allclose(out, ref, atol=5e-2, rtol=5e-2), "mismatch vs reference"

    print("KERNEL_OK")
</pallas_src>

<mosaic_0001>
module attributes {stable_mosaic.version = 11 : i64} {
  func.func @_mlp_kernel(%arg0: i32, %arg1: memref<128x128xbf16, #tpu.memory_space<vmem>>, %arg2: memref<128x128xbf16, #tpu.memory_space<vmem>>, %arg3: memref<1x128xf32, #tpu.memory_space<vmem>>, %arg4: memref<128x128xbf16, #tpu.memory_space<vmem>>, %arg5: memref<1x128xf32, #tpu.memory_space<vmem>>, %arg6: memref<128x128xf32, #tpu.memory_space<vmem>>) attributes {dimension_semantics = [#tpu.dimension_semantics<parallel>], iteration_bounds = array<i64: 1>, scalar_prefetch = 0 : i64, scratch_operands = 0 : i64, tpu.core_type = #tpu.core_type<tc>, window_params = [{transform_indices = @transform_0, window_bounds = array<i64: 128, 128>}, {pipeline_mode = #tpu.pipeline_mode<synchronous>, transform_indices = @transform_1, window_bounds = array<i64: 128, 128>}, {pipeline_mode = #tpu.pipeline_mode<synchronous>, transform_indices = @transform_2, window_bounds = array<i64: 1, 128>}, {pipeline_mode = #tpu.pipeline_mode<synchronous>, transform_indices = @transform_3, window_bounds = array<i64: 128, 128>}, {pipeline_mode = #tpu.pipeline_mode<synchronous>, transform_indices = @transform_4, window_bounds = array<i64: 1, 128>}, {transform_indices = @transform_5, window_bounds = array<i64: 128, 128>}]} {
    %c0 = arith.constant 0 : index
    %c0_0 = arith.constant 0 : index
    %0 = vector.load %arg1[%c0, %c0_0] : memref<128x128xbf16, #tpu.memory_space<vmem>>, vector<128x128xbf16>
    %c0_1 = arith.constant 0 : index
    %c0_2 = arith.constant 0 : index
    %1 = vector.load %arg2[%c0_1, %c0_2] : memref<128x128xbf16, #tpu.memory_space<vmem>>, vector<128x128xbf16>
    %cst = arith.constant dense<0.000000e+00> : vector<128x128xf32>
    %2 = tpu.matmul %0, %1, %cst {dimension_numbers = #tpu.dot_dimension_numbers<[1], [0], [0], [1], [0, 0, 1, 1], [], []>} : vector<128x128xbf16>, vector<128x128xbf16>, vector<128x128xf32> -> vector<128x128xf32>
    %c0_3 = arith.constant 0 : index
    %c0_4 = arith.constant 0 : index
    %3 = vector.load %arg3[%c0_3, %c0_4] : memref<1x128xf32, #tpu.memory_space<vmem>>, vector<1x128xf32>
    %4 = vector.broadcast %3 : vector<1x128xf32> to vector<128x128xf32>
    %5 = arith.addf %2, %4 : vector<128x128xf32>
    %cst_5 = arith.constant 0.000000e+00 : f32
    %6 = vector.broadcast %cst_5 : f32 to vector<128x128xf32>
    %7 = arith.maximumf %5, %6 : vector<128x128xf32>
    %8 = arith.truncf %7 : vector<128x128xf32> to vector<128x128xbf16>
    %c0_6 = arith.constant 0 : index
    %c0_7 = arith.constant 0 : index
    %9 = vector.load %arg4[%c0_6, %c0_7] : memref<128x128xbf16, #tpu.memory_space<vmem>>, vector<128x128xbf16>
    %cst_8 = arith.constant dense<0.000000e+00> : vector<128x128xf32>
    %10 = tpu.matmul %8, %9, %cst_8 {dimension_numbers = #tpu.dot_dimension_numbers<[1], [0], [0], [1], [0, 0, 1, 1], [], []>} : vector<128x128xbf16>, vector<128x128xbf16>, vector<128x128xf32> -> vector<128x128xf32>
    %c0_9 = arith.constant 0 : index
    %c0_10 = arith.constant 0 : index
    %11 = vector.load %arg5[%c0_9, %c0_10] : memref<1x128xf32, #tpu.memory_space<vmem>>, vector<1x128xf32>
    %12 = vector.broadcast %11 : vector<1x128xf32> to vector<128x128xf32>
    %13 = arith.addf %10, %12 : vector<128x128xf32>
    %c0_11 = arith.constant 0 : index
    %c0_12 = arith.constant 0 : index
    %14 = vector.load %arg6[%c0_11, %c0_12] : memref<128x128xf32, #tpu.memory_space<vmem>>, vector<128x128xf32>
    tpu.vector_store %arg6[%c0_11, %c0_12], %13 {strides = array<i32>} : memref<128x128xf32, #tpu.memory_space<vmem>>, vector<128x128xf32>,
    return
  }
  func.func @transform_0(%arg0: i32) -> (i32, i32) {
    %c0_i32 = arith.constant 0 : i32
    %c0_i32_0 = arith.constant 0 : i32
    return %arg0, %c0_i32 : i32, i32
  }
  func.func @transform_1(%arg0: i32) -> (i32, i32) {
    %c0_i32 = arith.constant 0 : i32
    %c0_i32_0 = arith.constant 0 : i32
    %c0_i32_1 = arith.constant 0 : i32
    return %c0_i32, %c0_i32_0 : i32, i32
  }
  func.func @transform_2(%arg0: i32) -> (i32, i32) {
    %c0_i32 = arith.constant 0 : i32
    %c0_i32_0 = arith.constant 0 : i32
    %c0_i32_1 = arith.constant 0 : i32
    return %c0_i32, %c0_i32_0 : i32, i32
  }
  func.func @transform_3(%arg0: i32) -> (i32, i32) {
    %c0_i32 = arith.constant 0 : i32
    %c0_i32_0 = arith.constant 0 : i32
    %c0_i32_1 = arith.constant 0 : i32
    return %c0_i32, %c0_i32_0 : i32, i32
  }
  func.func @transform_4(%arg0: i32) -> (i32, i32) {
    %c0_i32 = arith.constant 0 : i32
    %c0_i32_0 = arith.constant 0 : i32
    %c0_i32_1 = arith.constant 0 : i32
    return %c0_i32, %c0_i32_0 : i32, i32
  }
  func.func @transform_5(%arg0: i32) -> (i32, i32) {
    %c0_i32 = arith.constant 0 : i32
    %c0_i32_0 = arith.constant 0 : i32
    return %arg0, %c0_i32 : i32, i32
  }
}

</mosaic_0001>

<bundles_post_ra>
// kernel: tpu_custom_call.1
= control target key start
LH: loop header
LB: loop body
LE: loop exit
PB: predicated region body
PF: predicated region fallthrough
CT: control target
= control target key end

     0   :  { %10 = vsyncpa [#allocation3], 0  ;;  %s877_s0 = inlined_call_operand.hbm [shape: bf16[128,128], index: 0, kind: input, shape index: {}]   ;;  %s878_s1 = inlined_call_operand.hbm [shape: bf16[128,128], index: 1, kind: input, shape index: {}]   ;;  %s879_s2 = inlined_call_operand.vmem [shape: f32[1,128], index: 2, kind: input, shape index: {}]   ;;  %s880_s3 = inlined_call_operand.hbm [shape: bf16[128,128], index: 3, kind: input, shape index: {}]   ;;  %s881_s4 = inlined_call_operand.vmem [shape: f32[1,128], index: 4, kind: input, shape index: {}]   ;;  %s882_s5 = inlined_call_operand.hbm [shape: f32[128,128], index: 5, kind: output, shape index: {}]  }
   0x1   :  { %11 = vsyncpa [#allocation6], 0 }
   0x2   :  { %12 = vsyncpa [#allocation4], 0  ;;  %s769_s18 = smov [#allocation5]   ;;  %s770_s20 = smov [#allocation2]  }
   0x3   :  { %s30_s19 = sshll.u32 %s769_s18, 4  ;;  %s18_s21 = sshll.u32 %s770_s20, 4  ;;  %s31_s19 = int_to_ptr.vmem [resolvable:$true] %s30_s19  ;;  %s807_s21 = int_to_ptr.vmem [resolvable:$true] %s18_s21 }
   0x4   :  { %s675_s24 = scalar_lea.hbm %s878_s1, 1024 }
   0x5   :  { %p676_p0 = scmp.ne.s32.totalorder %s878_s1, %s675_s24  ;;  %p679_p1 = scmp.lt.u32.totalorder %s675_s24, %s878_s1 }
   0x7   :  { %p681_p2 = pnand %p679_p1, %p676_p0 }
   0x9   :  { %684 = shalt.err (!%p681_p2)
}
   0xa   :  { %s685_s29 = scalar_lea.vmem %s31_s19, 1024  ;;  %p690_p4 = scmp.lt.s32.totalorder %s31_s19, %s31_s19 }
   0xb   :  { %p686_p3 = scmp.ne.s32.totalorder %s31_s19, %s685_s29  ;;  %p691_p5 = scmp.lt.s32.totalorder %s685_s29, %s685_s29 }
   0xd   :  { %p692_p6 = por %p691_p5, %p690_p4 }
   0xf   :  { %p693_p7 = pnand %p692_p6, %p686_p3 }
  0x11   :  { %696 = shalt.err (!%p693_p7)
}
  0x12   :  { %s771_s30 = smov 64   ;;  %s772_s6 = smov 4  }
  0x13   :  { %36 = dma.hbm_to_vmem [thread:$0]  %s878_s1, 1024, %s31_s19, [#allocation6], %s771_s30, %s771_s30, %s772_s6  }
  0x14   :  { %s697_s11 = scalar_lea.hbm %s877_s0, 1024 }
  0x15   :  { %p698_p8 = scmp.ne.s32.totalorder %s877_s0, %s697_s11  ;;  %p701_p9 = scmp.lt.u32.totalorder %s697_s11, %s877_s0 }
  0x17   :  { %p703_p10 = pnand %p701_p9, %p698_p8 }
  0x19   :  { %706 = shalt.err (!%p703_p10)
}
  0x1a   :  { %s707_s16 = scalar_lea.vmem %s807_s21, 1024  ;;  %p712_p12 = scmp.lt.s32.totalorder %s807_s21, %s807_s21 }
  0x1b   :  { %p708_p11 = scmp.ne.s32.totalorder %s807_s21, %s707_s16  ;;  %p713_p13 = scmp.lt.s32.totalorder %s707_s16, %s707_s16 }
  0x1d   :  { %p714_p0 = por %p713_p13, %p712_p12 }
  0x1f   :  { %p715_p1 = pnand %p714_p0, %p708_p11 }
  0x21   :  { %718 = shalt.err (!%p715_p1)
}
  0x22   :  { %24 = dma.hbm_to_vmem [thread:$0]  %s877_s0, 1024, %s807_s21, [#allocation3], %s771_s30, %s771_s30, %s772_s6  }
  0x23   :  { %s773_s18 = smov [#allocation7]   ;;  %s719_s23 = scalar_lea.hbm %s880_s3, 1024 }
  0x24   :  { %s44_s19 = sshll.u32 %s773_s18, 4  ;;  %p720_p2 = scmp.ne.s32.totalorder %s880_s3, %s719_s23  ;;  %s45_s19 = int_to_ptr.vmem [resolvable:$true] %s44_s19 }
  0x25   :  { %p723_p3 = scmp.lt.u32.totalorder %s719_s23, %s880_s3 }
  0x27   :  { %p725_p4 = pnand %p723_p3, %p720_p2 }
  0x29   :  { %728 = shalt.err (!%p725_p4)
}
  0x2a   :  { %s729_s28 = scalar_lea.vmem %s45_s19, 1024  ;;  %p734_p6 = scmp.lt.s32.totalorder %s45_s19, %s45_s19 }
  0x2b   :  { %p730_p5 = scmp.ne.s32.totalorder %s45_s19, %s729_s28  ;;  %p735_p7 = scmp.lt.s32.totalorder %s729_s28, %s729_s28 }
  0x2d   :  { %p736_p8 = por %p735_p7, %p734_p6 }
  0x2f   :  { %p737_p9 = pnand %p736_p8, %p730_p5 }
  0x31   :  { %740 = shalt.err (!%p737_p9)
}
  0x32   :  { %50 = dma.hbm_to_vmem [thread:$0]  %s880_s3, 1024, %s45_s19, [#allocation6], %s771_s30, %s771_s30, %s772_s6  }
  0x33   :  { %763 = dma.done.wait [#allocation3], 1024  }
  0x34   :  { %764 = vsyncadd [#allocation3], 4294966272 }
  0x35   :  { %765 = dma.done.wait [#allocation6], 2048  }
  0x36   :  { %766 = vsyncadd [#allocation6], 4294965248  ;;  %v651_v0 = vld [vmem:[#allocation5] sm:$0xff]   ;;  %v652_v1 = vld [vmem:[#allocation5 + $0x8] sm:$0xff]  }
  0x37   :  { %579 = vmatprep.subr.bf16.mxu0 %v651_v0  ;;  %v653_v2 = vld [vmem:[#allocation5 + $0x10] sm:$0xff]   ;;  %v654_v3 = vld [vmem:[#allocation5 + $0x18] sm:$0xff]   ;;  %v659_v4 = vld [vmem:[#allocation2] sm:$0xff]  }
  0x38   :  { %580 = vmatpush3.bf16.msra.mxu0 %v651_v0  ;;  %595 = vmatprep.mubr.bf16.mxu0 %v659_v4  ;;  %v655_v5 = vld [vmem:[#allocation5 + $0x20] sm:$0xff]   ;;  %v656_v6 = vld [vmem:[#allocation5 + $0x28] sm:$0xff]   ;;  %v657_v9 = vld [vmem:[#allocation5 + $0x30] sm:$0xff]  }
  0x39   :  { %581 = vmatprep.subr.bf16.mxu0 %v652_v1  ;;  %v667_v7 = vld [vmem:[#allocation7] sm:$0xff]   ;;  %v668_v8 = vld [vmem:[#allocation7 + $0x8] sm:$0xff]   ;;  %v669_v10 = vld [vmem:[#allocation7 + $0x10] sm:$0xff]  }
  0x3a   :  { %611 = vmatprep.subr.bf16.mxu1 %v667_v7  ;;  %v658_v11 = vld [vmem:[#allocation5 + $0x38] sm:$0xff]   ;;  %v671_v13 = vld [vmem:[#allocation7 + $0x20] sm:$0xff]   ;;  %v660_v14 = vld [vmem:[#allocation2 + $0x8] sm:$0xff]  }
  0x3b   :  { %612 = vmatpush3.bf16.msra.mxu1 %v667_v7  ;;  %v670_v12 = vld [vmem:[#allocation7 + $0x18] sm:$0xff]   ;;  %v661_v15 = vld [vmem:[#allocation2 + $0x10] sm:$0xff]   ;;  %v672_v16 = vld [vmem:[#allocation7 + $0x28] sm:$0xff]  }
  0x3c   :  { %582 = vmatpush3.bf16.msra.mxu0 %v652_v1  ;;  %613 = vmatprep.subr.bf16.mxu1 %v668_v8  ;;  %v662_v17 = vld [vmem:[#allocation2 + $0x18] sm:$0xff]   ;;  %v663_v18 = vld [vmem:[#allocation2 + $0x20] sm:$0xff]   ;;  %v664_v19 = vld [vmem:[#allocation2 + $0x28] sm:$0xff]  }
  0x3d   :  { %583 = vmatprep.subr.bf16.mxu0 %v653_v2  ;;  %v665_v20 = vld [vmem:[#allocation2 + $0x30] sm:$0xff]   ;;  %v666_v21 = vld [vmem:[#allocation2 + $0x38] sm:$0xff]   ;;  %v521_v24 = vld [vmem:[%s879_s2] ss:$0 sm:$0xff] }
  0x3e   :  { %v673_v22 = vld [vmem:[#allocation7 + $0x30] sm:$0xff]   ;;  %v674_v23 = vld [vmem:[#allocation7 + $0x38] sm:$0xff]  }
  0x3f   :  { %614 = vmatpush3.bf16.msra.mxu1 %v668_v8 }
  0x40   :  { %584 = vmatpush3.bf16.msra.mxu0 %v653_v2  ;;  %615 = vmatprep.subr.bf16.mxu1 %v669_v10 }
  0x41   :  { %585 = vmatprep.subr.bf16.mxu0 %v654_v3 }
  0x43   :  { %616 = vmatpush3.bf16.msra.mxu1 %v669_v10 }
  0x44   :  { %586 = vmatpush3.bf16.msra.mxu0 %v654_v3  ;;  %617 = vmatprep.subr.bf16.mxu1 %v670_v12 }
  0x45   :  { %587 = vmatprep.subr.bf16.mxu0 %v655_v5 }
  0x47   :  { %618 = vmatpush3.bf16.msra.mxu1 %v670_v12 }
  0x48   :  { %588 = vmatpush3.bf16.msra.mxu0 %v655_v5  ;;  %619 = vmatprep.subr.bf16.mxu1 %v671_v13 }
  0x49   :  { %589 = vmatprep.subr.bf16.mxu0 %v656_v6 }
  0x4b   :  { %620 = vmatpush3.bf16.msra.mxu1 %v671_v13 }
  0x4c   :  { %590 = vmatpush3.bf16.msra.mxu0 %v656_v6  ;;  %621 = vmatprep.subr.bf16.mxu1 %v672_v16 }
  0x4d   :  { %591 = vmatprep.subr.bf16.mxu0 %v657_v9 }
  0x4f   :  { %622 = vmatpush3.bf16.msra.mxu1 %v672_v16 }
  0x50   :  { %592 = vmatpush3.bf16.msra.mxu0 %v657_v9  ;;  %623 = vmatprep.subr.bf16.mxu1 %v673_v22 }
  0x51   :  { %593 = vmatprep.subr.bf16.mxu0 %v658_v11 }
  0x53   :  { %624 = vmatpush3.bf16.msra.mxu1 %v673_v22 }
  0x54   :  { %594 = vmatpush3.bf16.msra.mxu0 %v658_v11  ;;  %625 = vmatprep.subr.bf16.mxu1 %v674_v23 }
  0x57   :  { %596 = vmatmul.mubr.bf16.vlgmr.msra.gmra.mrb[0].mxu0 %v660_v14  ;;  %626 = vmatpush3.bf16.msra.mxu1 %v674_v23 }
  0x58   :  { %599 = vmatprep.mubr.bf16.mxu0 %v661_v15 }
  0x5f   :  { %600 = vmatmul.mubr.bf16.gmra.mrb[4].mxu0 %v662_v17  ;;  %v538_v17 = vld [vmem:[%s881_s4] ss:$0 sm:$0xff]  ;;  %s774_s4 = smov [#allocation8]  }
  0x60   :  { %603 = vmatprep.mubr.bf16.mxu0 %v663_v18  ;;  %s508_s6 = sshll.u32 %s774_s4, 4  ;;  %s509_s6 = int_to_ptr.vmem [resolvable:$true] %s508_s6 }
  0x61   :  { %s741_s7 = scalar_lea.vmem %s509_s6, 2048  ;;  %p746_p11 = scmp.lt.s32.totalorder %s509_s6, %s509_s6 }
  0x62   :  { %p742_p10 = scmp.ne.s32.totalorder %s509_s6, %s741_s7  ;;  %p747_p12 = scmp.lt.s32.totalorder %s741_s7, %s741_s7 }
  0x64   :  { %p748_p13 = por %p747_p12, %p746_p11 }
  0x66   :  { %p749_p0 = pnand %p748_p13, %p742_p10 }
  0x67   :  { %604 = vmatmul.mubr.bf16.gmra.mrb[8].mxu0 %v664_v19 }
  0x68   :  { %607 = vmatprep.mubr.bf16.mxu0 %v665_v20 }
  0x6f   :  { %608 = vmatmul.mubr.bf16.gmra.mrb[12].mxu0 %v666_v21 }
 0x12a   :  { %v597_v25 = vpop.f32.mrb[0].mxu0 }
 0x12b   :  { %v241_v26 = vadd.f32 %v597_v25, %v521_v24  ;;  %v232_v27 = vpop.f32.mrb[1].mxu0 }
 0x12c   :  { %v233_v28 = vadd.f32 %v521_v24, %v232_v27  ;;  %v598_v29 = vpop.f32.mrb[2].mxu0 }
 0x12d   :  { %v244_v30 = vadd.f32 %v598_v29, %v521_v24  ;;  %v235_v31 = vpop.f32.mrb[3].mxu0  ;;  %v297_v33 = vmax.f32 %v241_v26, 0.0 }
 0x12e   :  { %v236_v32 = vadd.f32 %v521_v24, %v235_v31  ;;  %v295_v35 = vmax.f32 %v233_v28, 0.0 }
 0x12f   :  { %v298_v34 = vmax.f32 %v244_v30, 0.0 }
 0x130   :  { %v296_v36 = vmax.f32 %v236_v32, 0.0 }
 0x131   :  { %v312_v37 = vpack.c.bf16 %v298_v34, %v297_v33 }
 0x132   :  { %v601_v38 = vpop.f32.mrb[4].mxu0  ;;  %v311_v39 = vpack.c.bf16 %v296_v36, %v295_v35 }
 0x133   :  { %v257_v40 = vadd.f32 %v601_v38, %v521_v24  ;;  %v248_v41 = vpop.f32.mrb[5].mxu0 }
 0x134   :  { %v249_v42 = vadd.f32 %v521_v24, %v248_v41  ;;  %v602_v43 = vpop.f32.mrb[6].mxu0  ;;  %627 = vmatprep.mubr.bf16.mxu1 %v311_v39 }
 0x135   :  { %v260_v44 = vadd.f32 %v602_v43, %v521_v24  ;;  %v251_v45 = vpop.f32.mrb[7].mxu0  ;;  %628 = vmatmul.mubr.bf16.vlgmr.msra.gmra.mrb[0].mxu1 %v312_v37  ;;  %v301_v47 = vmax.f32 %v257_v40, 0.0 }
 0x136   :  { %v252_v46 = vadd.f32 %v521_v24, %v251_v45  ;;  %v299_v49 = vmax.f32 %v249_v42, 0.0 }
 0x137   :  { %v302_v48 = vmax.f32 %v260_v44, 0.0 }
 0x138   :  { %v300_v50 = vmax.f32 %v252_v46, 0.0 }
 0x139   :  { %v314_v51 = vpack.c.bf16 %v302_v48, %v301_v47 }
 0x13a   :  { %v313_v52 = vpack.c.bf16 %v300_v50, %v299_v49  ;;  %v605_v53 = vpop.f32.mrb[8].mxu0 }
 0x13b   :  { %v273_v54 = vadd.f32 %v605_v53, %v521_v24  ;;  %v264_v55 = vpop.f32.mrb[9].mxu0 }
 0x13c   :  { %v265_v56 = vadd.f32 %v521_v24, %v264_v55  ;;  %v606_v57 = vpop.f32.mrb[10].mxu0  ;;  %631 = vmatprep.mubr.bf16.mxu1 %v313_v52 }
 0x13d   :  { %v276_v58 = vadd.f32 %v606_v57, %v521_v24  ;;  %v267_v59 = vpop.f32.mrb[11].mxu0  ;;  %632 = vmatmul.mubr.bf16.gmra.mrb[4].mxu1 %v314_v51  ;;  %v305_v61 = vmax.f32 %v273_v54, 0.0 }
 0x13e   :  { %v268_v60 = vadd.f32 %v521_v24, %v267_v59  ;;  %v303_v63 = vmax.f32 %v265_v56, 0.0 }
 0x13f   :  { %v306_v62 = vmax.f32 %v276_v58, 0.0 }
 0x140   :  { %v304_v0 = vmax.f32 %v268_v60, 0.0 }
 0x141   :  { %v316_v1 = vpack.c.bf16 %v306_v62, %v305_v61 }
 0x142   :  { %v315_v2 = vpack.c.bf16 %v304_v0, %v303_v63  ;;  %v609_v3 = vpop.f32.mrb[12].mxu0 }
 0x143   :  { %v289_v4 = vadd.f32 %v609_v3, %v521_v24  ;;  %v280_v5 = vpop.f32.mrb[13].mxu0 }
 0x144   :  { %v281_v6 = vadd.f32 %v521_v24, %v280_v5  ;;  %v610_v7 = vpop.f32.mrb[14].mxu0  ;;  %635 = vmatprep.mubr.bf16.mxu1 %v315_v2 }
 0x145   :  { %v292_v8 = vadd.f32 %v610_v7, %v521_v24  ;;  %v283_v9 = vpop.f32.mrb[15].mxu0  ;;  %636 = vmatmul.mubr.bf16.gmra.mrb[8].mxu1 %v316_v1  ;;  %v309_v11 = vmax.f32 %v289_v4, 0.0 }
 0x146   :  { %v284_v10 = vadd.f32 %v521_v24, %v283_v9  ;;  %v307_v13 = vmax.f32 %v281_v6, 0.0 }
 0x147   :  { %v310_v12 = vmax.f32 %v292_v8, 0.0 }
 0x148   :  { %v308_v14 = vmax.f32 %v284_v10, 0.0 }
 0x149   :  { %v318_v15 = vpack.c.bf16 %v310_v12, %v309_v11 }
 0x14a   :  { %v317_v16 = vpack.c.bf16 %v308_v14, %v307_v13 }
 0x14c   :  { %639 = vmatprep.mubr.bf16.mxu1 %v317_v16 }
 0x14d   :  { %640 = vmatmul.mubr.bf16.gmra.mrb[12].mxu1 %v318_v15 }
 0x208   :  { %v629_v18 = vpop.f32.mrb[0].mxu1 }
 0x209   :  { %v433_v19 = vadd.f32 %v629_v18, %v538_v17  ;;  %v424_v20 = vpop.f32.mrb[1].mxu1 }
 0x20a   :  { %v425_v21 = vadd.f32 %v538_v17, %v424_v20  ;;  %v630_v22 = vpop.f32.mrb[2].mxu1 }
 0x20b   :  { %489 = vst [vmem:[#allocation8 + $0x10] sm:$0xff] %v433_v19  ;;  %v436_v23 = vadd.f32 %v630_v22, %v538_v17  ;;  %v427_v24 = vpop.f32.mrb[3].mxu1 }
 0x20c   :  { %487 = vst [vmem:[#allocation8] sm:$0xff] %v425_v21  ;;  %v428_v25 = vadd.f32 %v538_v17, %v427_v24 }
 0x20d   :  { %490 = vst [vmem:[#allocation8 + $0x18] sm:$0xff] %v436_v23 }
 0x20e   :  { %488 = vst [vmem:[#allocation8 + $0x8] sm:$0xff] %v428_v25 }
 0x210   :  { %v633_v26 = vpop.f32.mrb[4].mxu1 }
 0x211   :  { %v449_v27 = vadd.f32 %v633_v26, %v538_v17  ;;  %v440_v28 = vpop.f32.mrb[5].mxu1 }
 0x212   :  { %v441_v29 = vadd.f32 %v538_v17, %v440_v28  ;;  %v634_v30 = vpop.f32.mrb[6].mxu1 }
 0x213   :  { %493 = vst [vmem:[#allocation8 + $0x30] sm:$0xff] %v449_v27  ;;  %v452_v31 = vadd.f32 %v634_v30, %v538_v17  ;;  %v443_v32 = vpop.f32.mrb[7].mxu1 }
 0x214   :  { %491 = vst [vmem:[#allocation8 + $0x20] sm:$0xff] %v441_v29  ;;  %v444_v33 = vadd.f32 %v538_v17, %v443_v32 }
 0x215   :  { %494 = vst [vmem:[#allocation8 + $0x38] sm:$0xff] %v452_v31 }
 0x216   :  { %492 = vst [vmem:[#allocation8 + $0x28] sm:$0xff] %v444_v33 }
 0x218   :  { %v637_v34 = vpop.f32.mrb[8].mxu1 }
 0x219   :  { %v465_v35 = vadd.f32 %v637_v34, %v538_v17  ;;  %v456_v36 = vpop.f32.mrb[9].mxu1 }
 0x21a   :  { %v457_v37 = vadd.f32 %v538_v17, %v456_v36  ;;  %v638_v38 = vpop.f32.mrb[10].mxu1 }
 0x21b   :  { %497 = vst [vmem:[#allocation8 + $0x50] sm:$0xff] %v465_v35  ;;  %v468_v39 = vadd.f32 %v638_v38, %v538_v17  ;;  %v459_v40 = vpop.f32.mrb[11].mxu1 }
 0x21c   :  { %495 = vst [vmem:[#allocation8 + $0x40] sm:$0xff] %v457_v37  ;;  %v460_v41 = vadd.f32 %v538_v17, %v459_v40 }
 0x21d   :  { %498 = vst [vmem:[#allocation8 + $0x58] sm:$0xff] %v468_v39 }
 0x21e   :  { %496 = vst [vmem:[#allocation8 + $0x48] sm:$0xff] %v460_v41 }
 0x220   :  { %v641_v42 = vpop.f32.mrb[12].mxu1 }
 0x221   :  { %v481_v43 = vadd.f32 %v641_v42, %v538_v17  ;;  %v472_v44 = vpop.f32.mrb[13].mxu1 }
 0x222   :  { %v473_v45 = vadd.f32 %v538_v17, %v472_v44  ;;  %v642_v46 = vpop.f32.mrb[14].mxu1 }
 0x223   :  { %501 = vst [vmem:[#allocation8 + $0x70] sm:$0xff] %v481_v43  ;;  %v484_v47 = vadd.f32 %v642_v46, %v538_v17  ;;  %v475_v48 = vpop.f32.mrb[15].mxu1 }
 0x224   :  { %499 = vst [vmem:[#allocation8 + $0x60] sm:$0xff] %v473_v45  ;;  %v476_v49 = vadd.f32 %v538_v17, %v475_v48 }
 0x225   :  { %502 = vst [vmem:[#allocation8 + $0x78] sm:$0xff] %v484_v47 }
 0x226   :  { %500 = vst [vmem:[#allocation8 + $0x68] sm:$0xff] %v476_v49 }
 0x227   :  { %752 = shalt.err (!%p749_p0)
}
 0x228   :  { %s753_s10 = scalar_lea.hbm %s882_s5, 2048 }
 0x229   :  { %p754_p1 = scmp.ne.s32.totalorder %s882_s5, %s753_s10  ;;  %p757_p2 = scmp.lt.u32.totalorder %s753_s10, %s882_s5 }
 0x22b   :  { %p759_p3 = pnand %p757_p2, %p754_p1 }
 0x22d   :  { %762 = shalt.err (!%p759_p3)
}
 0x22e   :  { %s775_s15 = smov 128   ;;  %s776_s16 = smov 8  }
 0x22f   :  { %514 = dma.vmem_to_hbm [thread:$0]  %s509_s6, 2048, %s882_s5, [#allocation4], %s775_s15, %s775_s15, %s776_s16  }
 0x230   :  { %767 = dma.done.wait [#allocation4], 2048  }
 0x231   :  { %768 = vsyncadd [#allocation4], 4294965248 }
 0x232   :  { %518 = vsyncpa [#allocation3], 1 }
 0x233   :  { %519 = vsyncpa [#allocation6], 1 }
 0x234   :  { %520 = vsyncpa [#allocation4], 1 }

</bundles_post_ra>
